<compile_context>
chip_gen: v7x
topology: tpu7x:2x2x1
jax: 0.10.0
libtpu: 0.0.40
codegen_flags: <defaults>
</compile_context>

<pallas_src>
import functools

import jax
import jax.numpy as jnp
from jax.experimental import pallas as pl
from jax.experimental.pallas import tpu as pltpu


# ---------------------------------------------------------------------------
# Kernels
# ---------------------------------------------------------------------------

def _se_fused_kernel(x_ref, w1t_ref, w2t_ref, o_ref, *, inv_hw):
    """Single-pass SE tile: squeeze -> excite -> scale.

    x_ref  : (TB, C, HW)  activation tile (HW = full spatial extent)
    w1t_ref: (C, Ch)      first Linear weight, pre-transposed to (in, out)
    w2t_ref: (Ch, C)      second Linear weight, pre-transposed to (in, out)
    """
    # Squeeze: global average pool with f32 accumulation over the lane axis.
    pooled = jnp.sum(x_ref[...].astype(jnp.float32), axis=-1) * inv_hw      # (TB, C)

    # Excitation: Linear -> ReLU -> Linear -> Sigmoid (bias-free), f32 math.
    h = jnp.maximum(
        jnp.dot(pooled, w1t_ref[...], preferred_element_type=jnp.float32), 0.0)
    s = jax.nn.sigmoid(
        jnp.dot(h, w2t_ref[...], preferred_element_type=jnp.float32))       # (TB, C)

    # Scale: re-read x in its native dtype (no full-tile f32 copy kept live).
    o_ref[...] = x_ref[...] * s.astype(o_ref.dtype)[:, :, None]


def _se_pool_excite_kernel(x_ref, w1t_ref, w2t_ref, s_ref, acc_ref, *,
                           inv_hw, hw_total, hw_tile, mask_tail):
    """Spatially tiled squeeze + excite.

    Accumulates the pooled sum across the 'arbitrary' HW grid axis in a small
    VMEM scratch and emits s = sigmoid(W2 relu(W1 pooled)) on the last HW step.
    x_ref: (1, C, THW); s_ref: (1, 1, C); acc_ref: (1, C) f32 scratch.
    """
    k = pl.program_id(1)

    @pl.when(k == 0)
    def _():
        acc_ref[...] = jnp.zeros_like(acc_ref)

    xf = x_ref[...].astype(jnp.float32)                                     # (1, C, THW)
    if mask_tail:
        col = jax.lax.broadcasted_iota(jnp.int32, xf.shape, 2) + k * hw_tile
        xf = jnp.where(col < hw_total, xf, 0.0)
    acc_ref[...] += jnp.sum(xf, axis=-1)                                    # (1, C)

    @pl.when(k == pl.num_programs(1) - 1)
    def _():
        pooled = acc_ref[...] * inv_hw                                      # (1, C)
        h = jnp.maximum(
            jnp.dot(pooled, w1t_ref[...], preferred_element_type=jnp.float32), 0.0)
        s = jax.nn.sigmoid(
            jnp.dot(h, w2t_ref[...], preferred_element_type=jnp.float32))   # (1, C)
        s_ref[...] = s[None]                                                # (1, 1, C)


def _se_scale_kernel(x_ref, s_ref, o_ref):
    """Spatially tiled scale: o = x * s.  x_ref: (1, C, THW); s_ref: (1, 1, C)."""
    s = s_ref[...][0]                                                       # (1, C)
    o_ref[...] = x_ref[...] * s.astype(o_ref.dtype)[:, :, None]


# ---------------------------------------------------------------------------
# Sizing heuristics
# ---------------------------------------------------------------------------

def _tpu_generation_params():
    """Returns (target activation-block bytes, usable VMEM budget bytes)."""
    kind = ""
    try:
        kind = jax.devices()[0].device_kind.lower()
    except Exception:
        pass
    vmem_cap = 128 << 20
    try:
        vmem_cap = int(pltpu.get_tpu_info().vmem_capacity_bytes)
    except Exception:
        if "7" in kind:
            vmem_cap = 64 << 20
    if vmem_cap <= (64 << 20) or "7" in kind:
        target = 6 << 20    # v7x: ~3.2 TB/s HBM, 64 MiB VMEM -> big blocks
    elif "v5 lite" in kind or "v5e" in kind or "v5lite" in kind:
        target = 2 << 20    # v5e: 2 MiB already ~93% of the HBM roofline
    else:
        target = 4 << 20    # v6e / unknown 128 MiB-VMEM part
    budget = int(0.75 * vmem_cap)
    return target, budget


def _choose_batch_tile(B, bytes_per_batch, target_bytes):
    tb = max(1, min(B, target_bytes // max(bytes_per_batch, 1)))
    # Keep >= 4 grid steps when the batch allows (>= 2 per TensorCore on
    # dual-core parts) so input prefetch / output writeback overlap compute.
    if B >= 4:
        tb = min(tb, max(1, B // 4))
    elif B >= 2:
        tb = min(tb, max(1, B // 2))
    return int(tb)


def _choose_hw_tile(HW, bytes_per_col, target_bytes, vmem_budget):
    by_target = target_bytes // max(bytes_per_col, 1)
    # The scale pass holds 2 input + 2 output blocks; leave ~4 MiB slack.
    by_budget = max(0, vmem_budget - (4 << 20)) // (4 * max(bytes_per_col, 1))
    thw = min(by_target, by_budget, HW)
    thw = max(128, (int(thw) // 128) * 128)
    return int(thw)


# ---------------------------------------------------------------------------
# Wrapper
# ---------------------------------------------------------------------------

@functools.partial(jax.jit, static_argnames=("hw_block",))
def se_block(x, w1, w2, hw_block=None):
    """SEBlock forward.  x: (B, C, H, W); w1: (C//r, C); w2: (C_out, C//r).

    hw_block: optional static spatial-tile override forcing the two-pass,
    spatially tiled path (used for very large feature maps / testing).
    """
    B, C, H, W = x.shape
    Ch, Cin = w1.shape
    Cout = w2.shape[0]
    assert Cin == C and w2.shape[1] == Ch
    # `x * w.expand_as(x)` in the PyTorch module requires out_channels == in_channels.
    assert Cout == C, "SEBlock scale requires out_channels == in_channels"

    HW = H * W
    x_flat = x.reshape(B, C, HW)        # contiguous reshape: no extra HBM pass
    # Hoist the weight transposes out of the kernel (one-time tiny XLA op).
    w1t = w1.T                          # (C, Ch)
    w2t = w2.T                          # (Ch, C)

    itemsize = jnp.dtype(x.dtype).itemsize
    wbytes = int((w1.size + w2.size) * jnp.dtype(w1.dtype).itemsize)
    C_pad = ((C + 7) // 8) * 8          # sublane padding of the (.., C, HW) tile
    target_bytes, vmem_budget = _tpu_generation_params()

    bytes_per_batch = C_pad * HW * itemsize
    # Single-pass path needs 2 in + 2 out buffered blocks of >= one batch element.
    single_pass_need = 4 * bytes_per_batch + 4 * wbytes + (4 << 20)
    use_hw_tiling = (hw_block is not None) or (single_pass_need > vmem_budget)

    inv_hw = 1.0 / float(HW)

    if not use_hw_tiling:
        # ---- Path A: one fused kernel, grid over batch tiles ----------------
        TB = _choose_batch_tile(B, bytes_per_batch, target_bytes)
        grid = (pl.cdiv(B, TB),)
        block_bytes = TB * bytes_per_batch
        vmem_need = 4 * block_bytes + 4 * wbytes + (2 << 20)
        vmem_limit = int(min(max(vmem_need, 16 << 20), vmem_budget))

        cost = pl.CostEstimate(
            flops=int(2 * B * C * HW + 2 * B * (C * Ch + Ch * C)),
            transcendentals=int(B * C),
            bytes_accessed=int(2 * B * C * HW * itemsize + wbytes),
        )
        out = pl.pallas_call(
            functools.partial(_se_fused_kernel, inv_hw=inv_hw),
            out_shape=jax.ShapeDtypeStruct((B, C, HW), x.dtype),
            grid_spec=pltpu.PrefetchScalarGridSpec(
                num_scalar_prefetch=0,
                grid=grid,
                in_specs=[
                    pl.BlockSpec((TB, C, HW), lambda b: (b, 0, 0)),
                    pl.BlockSpec((C, Ch), lambda b: (0, 0)),
                    pl.BlockSpec((Ch, C), lambda b: (0, 0)),
                ],
                out_specs=pl.BlockSpec((TB, C, HW), lambda b: (b, 0, 0)),
            ),
            compiler_params=pltpu.CompilerParams(
                dimension_semantics=("parallel",),
                vmem_limit_bytes=vmem_limit,
            ),
            cost_estimate=cost,
        )(x_flat, w1t, w2t)
        return out.reshape(B, C, H, W)

    # ---- Path B: spatially tiled two-pass path for large C*HW slabs ---------
    if hw_block is not None:
        THW = max(128, (int(hw_block) // 128) * 128)
    else:
        THW = _choose_hw_tile(HW, C_pad * itemsize, target_bytes, vmem_budget)
    n_hw = int(pl.cdiv(HW, THW))
    mask_tail = (n_hw * THW) != HW
    block_bytes = C_pad * THW * itemsize

    # Pass 1: pooled sum accumulated across HW; excitation on the last HW step.
    vmem_limit1 = int(min(max(3 * block_bytes + 4 * wbytes + (2 << 20), 16 << 20),
                          vmem_budget))
    pool_cost = pl.CostEstimate(
        flops=int(B * C * HW + 2 * B * (C * Ch + Ch * C)),
        transcendentals=int(B * C),
        bytes_accessed=int(B * C * HW * itemsize + wbytes),
    )
    s = pl.pallas_call(
        functools.partial(_se_pool_excite_kernel, inv_hw=inv_hw, hw_total=HW,
                          hw_tile=THW, mask_tail=mask_tail),
        out_shape=jax.ShapeDtypeStruct((B, 1, C), jnp.float32),
        grid_spec=pltpu.PrefetchScalarGridSpec(
            num_scalar_prefetch=0,
            grid=(B, n_hw),
            in_specs=[
                pl.BlockSpec((1, C, THW), lambda b, k: (b, 0, k)),
                pl.BlockSpec((C, Ch), lambda b, k: (0, 0)),
                pl.BlockSpec((Ch, C), lambda b, k: (0, 0)),
            ],
            out_specs=pl.BlockSpec((1, 1, C), lambda b, k: (b, 0, 0)),
            scratch_shapes=[pltpu.VMEM((1, C), jnp.float32)],
        ),
        compiler_params=pltpu.CompilerParams(
            dimension_semantics=("parallel", "arbitrary"),
            vmem_limit_bytes=vmem_limit1,
        ),
        cost_estimate=pool_cost,
    )(x_flat, w1t, w2t)

    # Pass 2: scale every spatial tile by its batch element's s.
    vmem_limit2 = int(min(max(4 * block_bytes + (2 << 20), 16 << 20), vmem_budget))
    scale_cost = pl.CostEstimate(
        flops=int(B * C * HW),
        transcendentals=0,
        bytes_accessed=int(2 * B * C * HW * itemsize),
    )
    out = pl.pallas_call(
        _se_scale_kernel,
        out_shape=jax.ShapeDtypeStruct((B, C, HW), x.dtype),
        grid_spec=pltpu.PrefetchScalarGridSpec(
            num_scalar_prefetch=0,
            grid=(B, n_hw),
            in_specs=[
                pl.BlockSpec((1, C, THW), lambda b, k: (b, 0, k)),
                pl.BlockSpec((1, 1, C), lambda b, k: (b, 0, 0)),
            ],
            out_specs=pl.BlockSpec((1, C, THW), lambda b, k: (b, 0, k)),
        ),
        compiler_params=pltpu.CompilerParams(
            dimension_semantics=("parallel", "parallel"),
            vmem_limit_bytes=vmem_limit2,
        ),
        cost_estimate=scale_cost,
    )(x_flat, s)
    return out.reshape(B, C, H, W)


def se_block_reference(x, w1, w2):
    """Pure-JAX reference matching the PyTorch forward."""
    pooled = jnp.mean(x, axis=(2, 3))                 # (B, C)
    h = jnp.maximum(pooled @ w1.T, 0.0)               # (B, C//r)
    s = jax.nn.sigmoid(h @ w2.T)                      # (B, C_out)
    return x * s[:, :, None, None]


if __name__ == "__main__":
    # Shapes implied by the module: batch=2, in=out channels=4, 16x16, reduction=1.
    B, C, H, W = 2, 4, 16, 16
    reduction = 1
    Ch = C // reduction

    key = jax.random.PRNGKey(0)
    kx, k1, k2 = jax.random.split(key, 3)
    x = jax.random.normal(kx, (B, C, H, W), dtype=jnp.float32)
    bound1 = 1.0 / (C ** 0.5)
    bound2 = 1.0 / (Ch ** 0.5)
    w1 = jax.random.uniform(k1, (Ch, C), jnp.float32, -bound1, bound1)
    w2 = jax.random.uniform(k2, (C, Ch), jnp.float32, -bound2, bound2)

    out = jax.block_until_ready(se_block(x, w1, w2))
    ref = se_block_reference(x, w1, w2)
    assert out.shape == (B, C, H, W)
    assert jnp.allclose(out, ref, atol=1e-5, rtol=1e-5), "fused path mismatch"

    # Also exercise the spatially tiled (large-feature-map) path with a forced
    # 128-wide HW tile and a partial tail block (HW = 200).
    B2, C2, H2, W2, r2 = 2, 8, 10, 20, 2
    Ch2 = C2 // r2
    x2 = jax.random.normal(kx, (B2, C2, H2, W2), dtype=jnp.float32)
    w1b = jax.random.uniform(k1, (Ch2, C2), jnp.float32,
                             -1.0 / (C2 ** 0.5), 1.0 / (C2 ** 0.5))
    w2b = jax.random.uniform(k2, (C2, Ch2), jnp.float32,
                             -1.0 / (Ch2 ** 0.5), 1.0 / (Ch2 ** 0.5))
    out2 = jax.block_until_ready(se_block(x2, w1b, w2b, hw_block=128))
    ref2 = se_block_reference(x2, w1b, w2b)
    assert jnp.allclose(out2, ref2, atol=1e-5, rtol=1e-5), "tiled path mismatch"

    print("KERNEL_OK")
</pallas_src>

<mosaic_0001>
module attributes {stable_mosaic.version = 11 : i64} {
  func.func @_se_fused_kernel(%arg0: i32, %arg1: memref<1x4x256xf32, #tpu.memory_space<vmem>>, %arg2: memref<4x4xf32, #tpu.memory_space<vmem>>, %arg3: memref<4x4xf32, #tpu.memory_space<vmem>>, %arg4: memref<1x4x256xf32, #tpu.memory_space<vmem>>) attributes {dimension_semantics = [#tpu.dimension_semantics<parallel>], iteration_bounds = array<i64: 2>, scalar_prefetch = 0 : i64, scratch_operands = 0 : i64, tpu.core_type = #tpu.core_type<tc>, window_params = [{transform_indices = @transform_0, window_bounds = array<i64: 1, 4, 256>}, {pipeline_mode = #tpu.pipeline_mode<synchronous>, transform_indices = @transform_1, window_bounds = array<i64: 4, 4>}, {pipeline_mode = #tpu.pipeline_mode<synchronous>, transform_indices = @transform_2, window_bounds = array<i64: 4, 4>}, {transform_indices = @transform_3, window_bounds = array<i64: 1, 4, 256>}]} {
    %c0 = arith.constant 0 : index
    %c0_0 = arith.constant 0 : index
    %c0_1 = arith.constant 0 : index
    %0 = vector.load %arg1[%c0, %c0_0, %c0_1] : memref<1x4x256xf32, #tpu.memory_space<vmem>>, vector<1x4x256xf32>
    %cst = arith.constant dense<0.000000e+00> : vector<1x4xf32>
    %1 = vector.multi_reduction <add>, %0, %cst [2] : vector<1x4x256xf32> to vector<1x4xf32>
    %cst_2 = arith.constant 3.906250e-03 : f32
    %2 = vector.broadcast %cst_2 : f32 to vector<1x4xf32>
    %3 = arith.mulf %1, %2 : vector<1x4xf32>
    %c0_3 = arith.constant 0 : index
    %c0_4 = arith.constant 0 : index
    %4 = vector.load %arg2[%c0_3, %c0_4] : memref<4x4xf32, #tpu.memory_space<vmem>>, vector<4x4xf32>
    %cst_5 = arith.constant dense<0.000000e+00> : vector<1x4xf32>
    %5 = tpu.matmul %3, %4, %cst_5 {dimension_numbers = #tpu.dot_dimension_numbers<[1], [0], [0], [1], [0, 0, 1, 1], [], []>} : vector<1x4xf32>, vector<4x4xf32>, vector<1x4xf32> -> vector<1x4xf32>
    %cst_6 = arith.constant 0.000000e+00 : f32
    %6 = vector.broadcast %cst_6 : f32 to vector<1x4xf32>
    %7 = arith.maximumf %5, %6 : vector<1x4xf32>
    %c0_7 = arith.constant 0 : index
    %c0_8 = arith.constant 0 : index
    %8 = vector.load %arg3[%c0_7, %c0_8] : memref<4x4xf32, #tpu.memory_space<vmem>>, vector<4x4xf32>
    %cst_9 = arith.constant dense<0.000000e+00> : vector<1x4xf32>
    %9 = tpu.matmul %7, %8, %cst_9 {dimension_numbers = #tpu.dot_dimension_numbers<[1], [0], [0], [1], [0, 0, 1, 1], [], []>} : vector<1x4xf32>, vector<4x4xf32>, vector<1x4xf32> -> vector<1x4xf32>
    %10 = arith.negf %9 : vector<1x4xf32>
    %11 = math.exp %10 : vector<1x4xf32>
    %cst_10 = arith.constant 1.000000e+00 : f32
    %12 = vector.broadcast %cst_10 : f32 to vector<1x4xf32>
    %13 = arith.addf %12, %11 : vector<1x4xf32>
    %14 = arith.divf %12, %13 : vector<1x4xf32>
    %c0_11 = arith.constant 0 : index
    %c0_12 = arith.constant 0 : index
    %c0_13 = arith.constant 0 : index
    %15 = vector.load %arg1[%c0_11, %c0_12, %c0_13] : memref<1x4x256xf32, #tpu.memory_space<vmem>>, vector<1x4x256xf32>
    %16 = vector.shape_cast %14 : vector<1x4xf32> to vector<1x4x1xf32>
    %17 = vector.broadcast %16 : vector<1x4x1xf32> to vector<1x4x256xf32>
    %18 = arith.mulf %15, %17 : vector<1x4x256xf32>
    %c0_14 = arith.constant 0 : index
    %c0_15 = arith.constant 0 : index
    %c0_16 = arith.constant 0 : index
    %19 = vector.load %arg4[%c0_14, %c0_15, %c0_16] : memref<1x4x256xf32, #tpu.memory_space<vmem>>, vector<1x4x256xf32>
    tpu.vector_store %arg4[%c0_14, %c0_15, %c0_16], %18 {strides = array<i32>} : memref<1x4x256xf32, #tpu.memory_space<vmem>>, vector<1x4x256xf32>,
    return
  }
  func.func @transform_0(%arg0: i32) -> (i32, i32, i32) {
    %c0_i32 = arith.constant 0 : i32
    %c0_i32_0 = arith.constant 0 : i32
    %c0_i32_1 = arith.constant 0 : i32
    return %arg0, %c0_i32, %c0_i32_0 : i32, i32, i32
  }
  func.func @transform_1(%arg0: i32) -> (i32, i32) {
    %c0_i32 = arith.constant 0 : i32
    %c0_i32_0 = arith.constant 0 : i32
    %c0_i32_1 = arith.constant 0 : i32
    return %c0_i32, %c0_i32_0 : i32, i32
  }
  func.func @transform_2(%arg0: i32) -> (i32, i32) {
    %c0_i32 = arith.constant 0 : i32
    %c0_i32_0 = arith.constant 0 : i32
    %c0_i32_1 = arith.constant 0 : i32
    return %c0_i32, %c0_i32_0 : i32, i32
  }
  func.func @transform_3(%arg0: i32) -> (i32, i32, i32) {
    %c0_i32 = arith.constant 0 : i32
    %c0_i32_0 = arith.constant 0 : i32
    %c0_i32_1 = arith.constant 0 : i32
    return %arg0, %c0_i32, %c0_i32_0 : i32, i32, i32
  }
}

</mosaic_0001>

<bundles_post_ra>
// kernel: se_block.1
= control target key start
LH: loop header
LB: loop body
LE: loop exit
PB: predicated region body
PF: predicated region fallthrough
CT: control target
= control target key end

     0   :  { %s502_s12 = smov 0   ;;  %s536_s0 = inlined_call_operand.vmem [shape: f32[2,4,256], index: 0, kind: input, shape index: {}]   ;;  %s537_s1 = inlined_call_operand.vmem [shape: f32[4,4], index: 1, kind: input, shape index: {}]   ;;  %s538_s2 = inlined_call_operand.vmem [shape: f32[4,4], index: 2, kind: input, shape index: {}]   ;;  %s539_s3 = inlined_call_operand.vmem [shape: f32[2,4,256], index: 3, kind: output, shape index: {}]  }
   0x1 LB: > { %s423_s13 = sadd.s32 4294967295, %s477_s12   ;;  %p427_p0 = scmp.ge.s32.totalorder %s477_s12, 1  ;;  %s477_s12 = sphi %s502_s12, %s13_s12  }
   0x2   : > { %p137_p1 = scmp.lt.s32.totalorder %s477_s12, 3 }
   0x4   : > { %p138_p2 = pnand %p427_p0, %p137_p1 }
   0x5   : > { %p161_p3 = scmp.lt.s32.totalorder (!%p138_p2), %s423_s13, 1  ;;  %vm175_vm0 = vcmask (!%p138_p2), 1043456   ;;  %v479_v5 = vmov (!%p138_p2), 0.0   ;;  %v182_v6 = vld [vmem:[%s537_s1] sm:$0xf] (!%p138_p2)  ;;  %vm480_vm1 = vmmov (!%p138_p2), 0   ;;  %v184_v7 = vlaneseq (!%p138_p2) }
   0x6   : > { %141 = sbr.rel (%p138_p2) target bundleno = 742 (0x2e6), region = 32  ;;  %445 = vmatprep.subr.mxu0 (!%p138_p2), %v479_v5  ;;  %450 = vmatprep.subr.mxu1 (!%p138_p2), %v479_v5  ;;  %vm190_vm2 = vcmask (!%p138_p2), 31744   ;;  %v267_v14 = vld [vmem:[%s538_s2] sm:$0xf] (!%p138_p2)  ;;  %v481_v26 = vmov (!%p138_p2), 839922192  }
   0x7   : > { %446 = vmatpush3.msk.msra.mxu0 (!%p138_p2), %vm175_vm0, %v182_v6  ;;  %447 = vmatprep.mubr.msk.f32.mxu0 (!%p138_p2), %vm480_vm1, %v479_v5  ;;  %v185_v8 = vand.u32 (!%p138_p2), 127, %v184_v7  ;;  %v187_v9 = vshrl.u32 (!%p138_p2), %v184_v7, 7  ;;  %v359_v27 = vunpack.c.l.s4 (!%p138_p2), %v481_v26 }
   0x8   : > { %452 = vmatprep.mubr.msk.f32.mxu1 (!%p138_p2), %vm480_vm1, %v479_v5  ;;  %451 = vmatpush3.msk.msra.mxu1 (!%p138_p2), %vm175_vm0, %v267_v14 }
   0x9   : > { %v188_v10 = vsub.s32 (!%p138_p2), %v185_v8, %v187_v9  ;;  %v352_v23 = vsub.s32 (!%p138_p2), 0, %v187_v9  ;;  %v360_v28 = vunpack.c.0.s8 (!%p138_p2), %v359_v27 }
   0xb   : > { %v363_v29 = vsub.s32 (!%p138_p2), %v360_v28, %v187_v9 }
   0xd   : > { %s541_s13 = smov (!%p161_p3, %s423_s13), 1 }
   0xe   : > { %s439_s14 = sshll.u32 %s541_s13, 3 }
   0xf   : > { %s165_s17 = scalar_lea.vmem %s536_s0, %s439_s14  ;;  %s170_s24 = scalar_lea.vmem %s539_s3, %s439_s14 }
  0x10   : > { %v171_v0 = vld [vmem:[%s165_s17] sm:$0xff] }
  0x11   : > { %v173_v1 = vcombine.high %v171_v0, %v171_v0  ;;  %v176_v2 = vsel %vm175_vm0, %v171_v0, 0.0 }
  0x13   : > { %v177_v3 = vsel %vm175_vm0, %v173_v1, 0.0 }
  0x14   : > { %v178_v4 = vadd.f32 %v177_v3, %v176_v2 }
  0x16   : > { %179 = vadd.xlane.f32.xlu0 %v178_v4 }
  0xa3   : > { %v180_v11 = vpop.xlane.xlu0 %179 }
  0xa4   : > { %v181_v12 = vmul.f32 0.00390625, %v180_v11 }
  0xa6   : > { %v189_v13 = vrot.slane %v181_v12, %v188_v10 }
  0xa8   : > { %448 = vmatmul.mubr.msk.f32.vlgmr.msra.gmra.mrb[0].mxu0 %vm190_vm2, %v189_v13 }
 0x17b   : > { %v262_v15 = vpop.f32.mrb[0].mxu0 }
 0x17c   : > { %v266_v16 = vmax.f32 %v262_v15, 0.0  ;;  %v449_v17 = vpop.f32.mrb[1].mxu0 }
 0x17e   : > { %453 = vmatmul.mubr.msk.f32.vlgmr.msra.gmra.mrb[0].mxu1 %vm190_vm2, %v266_v16 }
 0x251   : > { %v340_v18 = vpop.f32.mrb[0].mxu1 }
 0x252   : > { %v436_v19 = vmul.f32 -1.442695, %v340_v18  ;;  %v454_v20 = vpop.f32.mrb[1].mxu1 }
 0x254   : > { %467 = vpow2.f32 %v436_v19 }
 0x25e   : > { %v468_v21 = vpop.eup %467 }
 0x25f   : > { %v347_v22 = vadd.f32 1.0, %v468_v21 }
 0x261   : > { %469 = vrcp.f32 %v347_v22 }
 0x26b   : > { %v470_v24 = vpop.eup %469 }
 0x26c   : > { %v353_v25 = vrot.slane %v470_v24, %v352_v23 }
 0x26e   : > { %355 = vbcast.lane.b32.xlu0 %v353_v25, 256 }
 0x2e0   : > { %v356_v30 = vpop.permute.xlu0 %355 }
 0x2e1   : > { %v364_v31 = vrot.slane %v356_v30, %v363_v29 }
 0x2e3   : > { %v366_v32 = vmul.f32 %v364_v31, %v171_v0 }
 0x2e5   : > { %367 = vst [vmem:[%s170_s24] sm:$0xff] %v366_v32 }
 0x2e6 PF: > { %s13_s12 = sadd.s32 1, %s477_s12  }
 0x2e7   : > { %p10_p4 = scmp.ge.s32.totalorder %s13_s12, 4  }
 0x2e9   :  { %12 = sbr.rel (!%p10_p4) target bundleno = 1 (0x1), region = 62 }

</bundles_post_ra>
